<compile_context>
chip_gen: v5e
topology: v5e:2x2
jax: 0.10.0
libtpu: 0.0.40
codegen_flags: <defaults>
</compile_context>

<pallas_src>
import functools

import jax
import jax.numpy as jnp
import numpy as np
from jax.experimental import pallas as pl
from jax.experimental.pallas import tpu as pltpu


def _round_up(x, m):
    return (x + m - 1) // m * m


def _cdiv(a, b):
    return (a + b - 1) // b


def _scoped_vmem_cap_bytes():
    """Generation-aware scoped-VMEM cap: ~3/4 of physical, <= 96 MiB.

    v5e/v6e (128 MiB physical) -> 96 MiB; v7x (64 MiB physical) -> 48 MiB.
    Falls back to the conservative v7x-sized cap if the query is unavailable.
    """
    try:
        phys = getattr(pltpu.get_tpu_info(), "vmem_capacity_bytes", None)
        if phys:
            return int(min((phys * 3) // 4, 96 << 20))
    except Exception:
        pass
    return 48 << 20


def _pick_seq_tile(sp, ts_max):
    """Largest multiple of 8 that divides sp (itself a multiple of 8), <= ts_max."""
    ts_max = max(8, min(int(ts_max), sp))
    for t in range(ts_max - ts_max % 8, 7, -8):
        if sp % t == 0:
            return t
    return 8


def _t5_pooler_kernel(h_ref, w_ref, b_ref, o_ref, acc_ref, *, inv_seq_len):
    # h_ref: (TB, TS, D)  w_ref: (D, H)  b_ref: (1, H)  o_ref: (1, TB, H)
    # acc_ref: (TB, D) f32 scratch, resident across the sequence-reduction axis.
    k = pl.program_id(1)

    @pl.when(k == 0)
    def _init():
        acc_ref[...] = jnp.zeros_like(acc_ref)

    # Partial sum over this sequence tile; widen to f32 inside the reduction
    # for sub-f32 inputs (no full-tile f32 copy).
    h = h_ref[...]
    if h.dtype == jnp.float32:
        acc_ref[...] += jnp.sum(h, axis=1)
    else:
        acc_ref[...] += jnp.sum(h, axis=1, dtype=jnp.float32)

    @pl.when(k == pl.num_programs(1) - 1)
    def _finalize():
        # NOTE: scaling by 1/S before the matmul only changes rounding vs.
        # mean-then-matmul (well within 1e-5 of the reference).
        mean = acc_ref[...] * inv_seq_len                       # (TB, D) f32
        w = w_ref[...]                                          # native dtype
        if w.dtype != jnp.float32:
            mean = mean.astype(w.dtype)                         # native MXU path
        y = jnp.dot(mean, w, preferred_element_type=jnp.float32)  # (TB, H) f32
        y = y + b_ref[...]                                      # (1, H) broadcast
        o_ref[0] = jnp.tanh(y).astype(o_ref.dtype)


def t5_pooler(hidden_states, weight_t, bias, *, tb=64, ts=None, vmem_limit_bytes=None):
    """T5Pooler forward.

    hidden_states: [B, S, 768] (f32 or bf16)
    weight_t:      [768, H] -- PyTorch nn.Linear weight transposed ONCE at
                   parameter-load time (stored (in_features, out_features)),
                   removing the per-call weight.T HBM round trip.
    bias:          [H]
    returns:       [B, H] in hidden_states.dtype
    """
    B, S, D = hidden_states.shape
    D_w, H = weight_t.shape
    assert D_w == D, f"weight_t expects shape ({D}, H), got {weight_t.shape}"

    in_itemsize = jnp.dtype(hidden_states.dtype).itemsize
    w_itemsize = jnp.dtype(weight_t.dtype).itemsize
    b_itemsize = jnp.dtype(bias.dtype).itemsize
    out_itemsize = in_itemsize

    # ---- Batch tiling: >= 2 batch tiles whenever B >= 2 (v7x has 2 TensorCores)
    # and tiles sized to minimize zero-padding traffic.
    n_btiles = max(2 if B >= 2 else 1, _cdiv(B, tb))
    TB = _cdiv(B, n_btiles)
    Bp = TB * n_btiles

    # ---- Sequence tiling: pad only to a multiple of 8 (sublane), then pick the
    # largest multiple-of-8 divisor of Sp that fits the VMEM budget.
    Sp = _round_up(S, 8)

    vmem_cap = _scoped_vmem_cap_bytes()
    fixed_bytes = (D * H * w_itemsize          # weight (single-buffered)
                   + H * b_itemsize            # bias   (single-buffered)
                   + TB * D * 4                # f32 accumulator scratch
                   + 2 * TB * H * out_itemsize)  # output double buffer
    headroom = 4 << 20
    input_budget = max(vmem_cap - fixed_bytes - headroom,
                       2 * TB * 8 * D * in_itemsize)
    ts_by_vmem = input_budget // (2 * TB * D * in_itemsize)
    ts_max = ts if ts is not None else 1024
    TS = _pick_seq_tile(Sp, min(ts_max, ts_by_vmem))

    h = hidden_states
    if (Bp, Sp) != (B, S):
        # Zero padding is harmless: zero rows don't change the sum and we divide
        # by the ORIGINAL S; padded batch rows are sliced off below.
        # TODO(synk): for very large inputs, a masked tail tile would avoid the
        # extra HBM copy that jnp.pad introduces.
        h = jnp.pad(h, ((0, Bp - B), (0, Sp - S), (0, 0)))

    b2d = bias.reshape(1, H)
    grid = (Bp // TB, Sp // TS)

    needed = 2 * TB * TS * D * in_itemsize + fixed_bytes
    if vmem_limit_bytes is None:
        vmem_limit_bytes = int(min(max(needed + headroom, 32 << 20), vmem_cap))

    kernel = functools.partial(_t5_pooler_kernel, inv_seq_len=1.0 / S)

    out3 = pl.pallas_call(
        kernel,
        out_shape=jax.ShapeDtypeStruct((n_btiles, TB, H), hidden_states.dtype),
        grid_spec=pltpu.PrefetchScalarGridSpec(
            num_scalar_prefetch=0,
            grid=grid,
            in_specs=[
                # hidden_states: fresh (TB, TS, D) tile every step (pipelined).
                pl.BlockSpec((TB, TS, D), lambda i, k: (i, k, 0)),
                # Weight / bias: constant index_map -> resident, fetched once;
                # single-buffered so no VMEM is wasted on a second buffer.
                pl.BlockSpec((D, H), lambda i, k: (0, 0),
                             pipeline_mode=pl.Buffered(1)),
                pl.BlockSpec((1, H), lambda i, k: (0, 0),
                             pipeline_mode=pl.Buffered(1)),
            ],
            # Output block constant across the reduction axis (written at k==last).
            out_specs=pl.BlockSpec((1, TB, H), lambda i, k: (i, 0, 0)),
            scratch_shapes=[pltpu.VMEM((TB, D), jnp.float32)],
        ),
        compiler_params=pltpu.CompilerParams(
            dimension_semantics=("parallel", "arbitrary"),
            vmem_limit_bytes=vmem_limit_bytes,
        ),
        cost_estimate=pl.CostEstimate(
            flops=B * S * D + 2 * B * D * H,
            transcendentals=B * H,
            bytes_accessed=(B * S * D * in_itemsize + D * H * w_itemsize
                            + H * b_itemsize + B * H * out_itemsize),
        ),
    )(h, weight_t, b2d)

    out = out3.reshape(Bp, H)
    return out[:B] if Bp != B else out


if __name__ == "__main__":
    # Small, module-consistent shapes: batch=2, seq=8, in_features=768 (fixed by
    # nn.Linear(768, hidden_size)), hidden_size=128.
    B, S, D, H = 2, 8, 768, 128

    key = jax.random.PRNGKey(0)
    k_x, k_w, k_b = jax.random.split(key, 3)

    hidden_states = jax.random.normal(k_x, (B, S, D), dtype=jnp.float32)
    # nn.Linear(768, H) parameters stored pre-transposed as (in, out) = (768, H)
    # (PyTorch's weight.T done once at parameter-load time, not per call).
    weight_t = jax.random.normal(k_w, (D, H), dtype=jnp.float32) * 0.02
    bias = jax.random.normal(k_b, (H,), dtype=jnp.float32) * 0.02

    out = jax.block_until_ready(t5_pooler(hidden_states, weight_t, bias))

    # Reference (pure JAX) check of the same math.
    ref = jnp.tanh(jnp.mean(hidden_states, axis=1) @ weight_t + bias)
    np.testing.assert_allclose(np.asarray(out), np.asarray(ref), rtol=1e-5, atol=1e-5)

    print("KERNEL_OK")
</pallas_src>

<mosaic_0001>
module attributes {stable_mosaic.version = 11 : i64} {
  func.func @_t5_pooler_kernel(%arg0: i32, %arg1: i32, %arg2: memref<1x8x768xf32, #tpu.memory_space<vmem>>, %arg3: memref<768x128xf32, #tpu.memory_space<vmem>>, %arg4: memref<1x128xf32, #tpu.memory_space<vmem>>, %arg5: memref<1x1x128xf32, #tpu.memory_space<vmem>>, %arg6: memref<1x768xf32, #tpu.memory_space<vmem>>) attributes {dimension_semantics = [#tpu.dimension_semantics<parallel>, #tpu.dimension_semantics<arbitrary>], iteration_bounds = array<i64: 2, 1>, scalar_prefetch = 0 : i64, scratch_operands = 1 : i64, tpu.core_type = #tpu.core_type<tc>, window_params = [{transform_indices = @transform_0, window_bounds = array<i64: 1, 8, 768>}, {pipeline_mode = #tpu.pipeline_mode<synchronous>, transform_indices = @transform_1, window_bounds = array<i64: 768, 128>}, {pipeline_mode = #tpu.pipeline_mode<synchronous>, transform_indices = @transform_2, window_bounds = array<i64: 1, 128>}, {transform_indices = @transform_3, window_bounds = array<i64: 1, 1, 128>}]} {
    %c0_i32 = arith.constant 0 : i32
    %0 = arith.cmpi eq, %arg1, %c0_i32 : i32
    %1 = arith.extui %0 : i1 to i32
    %c0_i32_0 = arith.constant 0 : i32
    %2 = arith.cmpi ne, %1, %c0_i32_0 : i32
    scf.if %2 {
      %cst_9 = arith.constant 0.000000e+00 : f32
      %11 = vector.broadcast %cst_9 : f32 to vector<1x768xf32>
      %c0_10 = arith.constant 0 : index
      %c0_11 = arith.constant 0 : index
      %12 = vector.load %arg6[%c0_10, %c0_11] : memref<1x768xf32, #tpu.memory_space<vmem>>, vector<1x768xf32>
      tpu.vector_store %arg6[%c0_10, %c0_11], %11 {strides = array<i32>} : memref<1x768xf32, #tpu.memory_space<vmem>>, vector<1x768xf32>,
    } else {
    }
    %c0 = arith.constant 0 : index
    %c0_1 = arith.constant 0 : index
    %c0_2 = arith.constant 0 : index
    %3 = vector.load %arg2[%c0, %c0_1, %c0_2] : memref<1x8x768xf32, #tpu.memory_space<vmem>>, vector<1x8x768xf32>
    %c0_3 = arith.constant 0 : index
    %c0_4 = arith.constant 0 : index
    %4 = vector.load %arg6[%c0_3, %c0_4] : memref<1x768xf32, #tpu.memory_space<vmem>>, vector<1x768xf32>
    %cst = arith.constant dense<0.000000e+00> : vector<1x768xf32>
    %5 = vector.multi_reduction <add>, %3, %cst [1] : vector<1x8x768xf32> to vector<1x768xf32>
    %6 = arith.addf %4, %5 : vector<1x768xf32>
    %c0_5 = arith.constant 0 : index
    %c0_6 = arith.constant 0 : index
    %7 = vector.load %arg6[%c0_5, %c0_6] : memref<1x768xf32, #tpu.memory_space<vmem>>, vector<1x768xf32>
    tpu.vector_store %arg6[%c0_5, %c0_6], %6 {strides = array<i32>} : memref<1x768xf32, #tpu.memory_space<vmem>>, vector<1x768xf32>,
    %c0_i32_7 = arith.constant 0 : i32
    %8 = arith.cmpi eq, %arg1, %c0_i32_7 : i32
    %9 = arith.extui %8 : i1 to i32
    %c0_i32_8 = arith.constant 0 : i32
    %10 = arith.cmpi ne, %9, %c0_i32_8 : i32
    scf.if %10 {
      %c0_9 = arith.constant 0 : index
      %c0_10 = arith.constant 0 : index
      %11 = vector.load %arg6[%c0_9, %c0_10] : memref<1x768xf32, #tpu.memory_space<vmem>>, vector<1x768xf32>
      %cst_11 = arith.constant 1.250000e-01 : f32
      %12 = vector.broadcast %cst_11 : f32 to vector<1x768xf32>
      %13 = arith.mulf %11, %12 : vector<1x768xf32>
      %c0_12 = arith.constant 0 : index
      %c0_13 = arith.constant 0 : index
      %14 = vector.load %arg3[%c0_12, %c0_13] : memref<768x128xf32, #tpu.memory_space<vmem>>, vector<768x128xf32>
      %cst_14 = arith.constant dense<0.000000e+00> : vector<1x128xf32>
      %15 = tpu.matmul %13, %14, %cst_14 {dimension_numbers = #tpu.dot_dimension_numbers<[1], [0], [0], [1], [0, 0, 1, 1], [], []>} : vector<1x768xf32>, vector<768x128xf32>, vector<1x128xf32> -> vector<1x128xf32>
      %c0_15 = arith.constant 0 : index
      %c0_16 = arith.constant 0 : index
      %16 = vector.load %arg4[%c0_15, %c0_16] : memref<1x128xf32, #tpu.memory_space<vmem>>, vector<1x128xf32>
      %17 = arith.addf %15, %16 : vector<1x128xf32>
      %18 = math.tanh %17 : vector<1x128xf32>
      %c0_17 = arith.constant 0 : index
      %c0_18 = arith.constant 0 : index
      %c0_19 = arith.constant 0 : index
      %19 = vector.load %arg5[%c0_17, %c0_18, %c0_19] : memref<1x1x128xf32, #tpu.memory_space<vmem>>, vector<1x1x128xf32>
      %20 = vector.shape_cast %19 : vector<1x1x128xf32> to vector<1x128xf32>
      %21 = vector.shape_cast %18 : vector<1x128xf32> to vector<1x1x128xf32>
      tpu.vector_store %arg5[%c0_17, %c0_18, %c0_19], %21 {strides = array<i32>} : memref<1x1x128xf32, #tpu.memory_space<vmem>>, vector<1x1x128xf32>,
    } else {
    }
    return
  }
  func.func @transform_0(%arg0: i32, %arg1: i32) -> (i32, i32, i32) {
    %c0_i32 = arith.constant 0 : i32
    %c0_i32_0 = arith.constant 0 : i32
    return %arg0, %arg1, %c0_i32 : i32, i32, i32
  }
  func.func @transform_1(%arg0: i32, %arg1: i32) -> (i32, i32) {
    %c0_i32 = arith.constant 0 : i32
    %c0_i32_0 = arith.constant 0 : i32
    %c0_i32_1 = arith.constant 0 : i32
    return %c0_i32, %c0_i32_0 : i32, i32
  }
  func.func @transform_2(%arg0: i32, %arg1: i32) -> (i32, i32) {
    %c0_i32 = arith.constant 0 : i32
    %c0_i32_0 = arith.constant 0 : i32
    %c0_i32_1 = arith.constant 0 : i32
    return %c0_i32, %c0_i32_0 : i32, i32
  }
  func.func @transform_3(%arg0: i32, %arg1: i32) -> (i32, i32, i32) {
    %c0_i32 = arith.constant 0 : i32
    %c0_i32_0 = arith.constant 0 : i32
    %c0_i32_1 = arith.constant 0 : i32
    return %arg0, %c0_i32, %c0_i32_0 : i32, i32, i32
  }
}

</mosaic_0001>

<bundles_post_ra>
// kernel: tpu_custom_call.1
= control target key start
LH: loop header
LB: loop body
LE: loop exit
PB: predicated region body
PF: predicated region fallthrough
CT: control target
= control target key end

     0   :  { %8 = vsyncpa [#allocation4], 0  ;;  %s1067_s0 = inlined_call_operand.hbm [shape: f32[2,8,768], index: 0, kind: input, shape index: {}]   ;;  %s1068_s1 = inlined_call_operand.hbm [shape: f32[768,128], index: 1, kind: input, shape index: {}]   ;;  %s1069_s2 = inlined_call_operand.vmem [shape: f32[1,128], index: 2, kind: input, shape index: {}]   ;;  %s1070_s3 = inlined_call_operand.hbm [shape: f32[2,1,128], index: 3, kind: output, shape index: {}]  }
   0x1   :  { %10 = vsyncpa [#allocation4 + $0x1], 0 }
   0x2   :  { %11 = vsyncpa [#allocation7], 0 }
   0x3   :  { %12 = vsyncpa [#allocation5], 0 }
   0x4   :  { %14 = vsyncpa [#allocation5 + $0x1], 0  ;;  %s901_s12 = smov 0   ;;  %s903_s13 = smov 0  }
   0x5   :  { %s905_s14 = smov 0   ;;  %s907_s15 = smov 0  }
   0x6   :  { %s909_s16 = smov 0   ;;  %s911_s17 = smov 0  }
   0x7 LB: > { %s638_s18 = sadd.s32 4294967295, %s875_s17   ;;  %p640_p0 = scmp.ge.s32.totalorder %s875_s17, 1  ;;  %s875_s17 = sphi %s911_s17, %s20_s17   ;;  %s871_s16 = sphi %s909_s16, %s1083_s16   ;;  %s867_s15 = sphi %s907_s15, %s1082_s15   ;;  %s863_s14 = sphi %s905_s14, %s1081_s14   ;;  %s859_s13 = sphi %s903_s13, %s1080_s13   ;;  %s855_s12 = sphi %s901_s12, %s1079_s12  }
   0x8   : > { %p933_p1 = scmp.eq.s32.totalorder %s638_s18, 0  ;;  %p133_p2 = scmp.lt.s32.totalorder %s875_s17, 3 }
   0x9   : > { %s144_s22 = sshll.u32 %s1068_s1, 4  ;;  %s877_s24 = smov [#allocation6]   ;;  %s145_s22 = int_to_ptr.hbm [resolvable:$true] %s144_s22 }
   0xa   : > { %p941_p3 = pnand %p640_p0, %p133_p2  ;;  %s146_s25 = sshll.u32 %s877_s24, 4  ;;  %s147_s25 = int_to_ptr.vmem [resolvable:$true] %s146_s25 }
   0xb   : > { %p642_p6 = scmp.ge.s32.totalorder %s875_s17, 2  ;;  %s878_s26 = smov 128  }
   0xc   : > { %p659_p4 = pneg %p941_p3  ;;  %s879_s27 = smov 8  }
   0xd   : > { %s639_s28 = sadd.s32 4294967294, %s875_s17   ;;  %s32_s29 = sadd.s32 1, %s871_s16 }
   0xe   : > { %p660_p5 = pnand %p659_p4, %p933_p1  ;;  %s41_s30 = sadd.s32 1, %s863_s14 }
   0xf   : > { %p34_p7 = scmp.ge.s32.totalorder %s32_s29, 2  ;;  %p48_p8 = scmp.ne.s32.totalorder %s863_s14, %s859_s13 }
  0x10   : > { %662 = dma.hbm_to_vmem [thread:$0]  (!%p660_p5), %s145_s22, 12288, %s147_s25, [#allocation7], %s878_s26, %s878_s26, %s879_s27  }
  0x11   : > { %p49_p9 = scmp.eq.s32.totalorder %s875_s17, 0  ;;  %p54_p10 = scmp.ne.s32.totalorder %s859_s13, %s855_s12 }
  0x12   : > { %s1085_s29 = smov (%p34_p7, %s32_s29), 0  ;;  %p120_p13 = scmp.eq.s32.totalorder %s638_s18, 1 }
  0x13   : > { %p960_p11 = por %p49_p9, %p48_p8  ;;  %p966_p12 = por %p933_p1, %p54_p10 }
  0x14   : > { %s36_s6 = ssub.s32 %s871_s16, %s1085_s29  ;;  %p126_p2 = scmp.eq.s32.totalorder %s639_s28, 1 }
  0x15   : > { %p39_p0 = scmp.eq.s32.totalorder %s36_s6, 0  ;;  %p972_p4 = por %p120_p13, %p48_p8 }
  0x16   : > { %p672_p5 = scmp.lt.s32.totalorder %s875_s17, 2  ;;  %p980_p7 = por %p126_p2, %p54_p10 }
  0x17   : > { %s978_s8 = scalar_select %p39_p0, %s863_s14, %s41_s30  }
  0x18   : > { %s163_s10 = sand.u32 1, %s863_s14   ;;  %s649_s20 = smul.u32 48, %s871_s16 }
  0x19   : > { %s648_s11 = smul.u32 48, %s163_s10  ;;  %p664_p9 = pnand %p672_p5, %p960_p11 }
  0x1a   : > { %s174_s22 = scalar_lea.hbm %s1067_s0, %s649_s20  ;;  %s164_s27 = scalar_lea.sflag [#allocation4], %s163_s10 }
  0x1b   : > { %s167_s24 = scalar_lea.vmem [#allocation3], %s648_s11  ;;  %s176_s26 = sshll.u32 %s174_s22, 4  ;;  %s177_s26 = int_to_ptr.hbm [resolvable:$true] %s176_s26 }
  0x1c   : > { %s178_s25 = sshll.u32 %s167_s24, 4  ;;  %187 = sbr.rel (%p941_p3) target bundleno = 241 (0xf1), region = 32  ;;  %s179_s25 = int_to_ptr.vmem [resolvable:$true] %s178_s25 }
  0x1d   : > { %666 = dma.hbm_to_vmem [thread:$0]  (!%p664_p9), %s177_s26, 768, %s179_s25, %s164_s27  }
  0x1e   : > { %s994_s28 = sand.u32 (!%p941_p3), 1, %s859_s13  }
  0x1f   : > { %s650_s30 = smul.u32 (!%p941_p3), 48, %s994_s28  ;;  %s190_s4 = scalar_lea.sflag (!%p941_p3), [#allocation4], %s994_s28 }
  0x21   : > { %s998_s6 = scalar_lea.vmem [#allocation3], %s650_s30 }
  0x22   : > { %842 = dma.done.wait (%p966_p12), %s190_s4, 768  }
  0x23   : > { %844 = vsyncadd (%p966_p12), %s190_s4, 4294966528 }
  0x24   : > { %846 = dma.done.wait (%p933_p1), [#allocation7], 12288  }
  0x25   : > { %848 = vsyncadd (%p933_p1), [#allocation7], 4294955008  ;;  %v225_v0 = vlaneseq  ;;  %v880_v2 = vmov 0.0   ;;  %v321_v3 = vld [vmem:[#allocation6 + $0x78] sm:$0xff]  ;;  %v320_v4 = vld [vmem:[#allocation6 + $0x70] sm:$0xff]  ;;  %vm284_vm1 = vcmask 1040384   ;;  %s547_s11 = scalar_lea.hbm %s1070_s3, %s867_s15 }
  0x26   : > { %v337_v5 = vld [vmem:[#allocation6 + $0xf8] sm:$0xff]  ;;  %416 = vmatpush.msra.mxu0 %v321_v3  ;;  %v336_v6 = vld [vmem:[#allocation6 + $0xf0] sm:$0xff]  ;;  %v319_v7 = vld [vmem:[#allocation6 + $0x68] sm:$0xff]  ;;  %vm286_vm2 = vcmask 1041408   ;;  %vm288_vm3 = vcmask 1043459   ;;  %vm290_vm4 = vcmask 1044483  }
  0x27   : > { %vm1008_vm0 = vcmp.lt.s32.totalorder %v225_v0, 768  ;;  %436 = vmatpush.msra.mxu1 %v337_v5  ;;  %v335_v8 = vld [vmem:[#allocation6 + $0xe8] sm:$0xff]  ;;  %v318_v9 = vld [vmem:[#allocation6 + $0x60] sm:$0xff]  ;;  %v317_v11 = vld [vmem:[#allocation6 + $0x58] sm:$0xff]  ;;  %vm292_vm5 = vcmask 1042432   ;;  %s220_s20 = scalar_lea.vmem [#allocation8], %s994_s28 }
  0x28   : > { %229 = vst.msk [vmem:[#allocation2] sm:$0x3f] %vm1008_vm0, %v880_v2  ;;  %417 = vmatpush.msra.mxu0 %v320_v4  ;;  %v334_v10 = vld [vmem:[#allocation6 + $0xe0] sm:$0xff]  ;;  %v333_v12 = vld [vmem:[#allocation6 + $0xd8] sm:$0xff]  ;;  %v316_v13 = vld [vmem:[#allocation6 + $0x50] sm:$0xff]  ;;  %s549_s21 = sshll.u32 %s220_s20, 4  ;;  %s550_s21 = int_to_ptr.vmem [resolvable:$true] %s549_s21 }
  0x29   : > { %437 = vmatpush.msra.mxu1 %v336_v6  ;;  %v353_v14 = vld [vmem:[#allocation6 + $0x178] sm:$0xff]  ;;  %v332_v15 = vld [vmem:[#allocation6 + $0xd0] sm:$0xff]  ;;  %v351_v18 = vld [vmem:[#allocation6 + $0x168] sm:$0xff]  ;;  %s551_s18 = sshll.u32 %s547_s11, 4  ;;  %s539_s22 = scalar_lea.sflag [#allocation5], %s994_s28  ;;  %s552_s18 = int_to_ptr.hbm [resolvable:$true] %s551_s18 }
  0x2a   : > { %418 = vmatpush.msra.mxu0 %v319_v7  ;;  %456 = vmatpush.msra.mxu2 %v353_v14  ;;  %v352_v16 = vld [vmem:[#allocation6 + $0x170] sm:$0xff]  ;;  %v369_v17 = vld [vmem:[#allocation6 + $0x1f8] sm:$0xff]  ;;  %v315_v20 = vld [vmem:[#allocation6 + $0x48] sm:$0xff]  ;;  %s803_s24 = sshra.s32 %s552_s18, 4  ;;  %s809_s15 = scalar_lea.hbm %s1070_s3, 2  ;;  %s804_s24 = int_to_ptr.hbm [resolvable:$true] %s803_s24 }
  0x2b   : > { %438 = vmatpush.msra.mxu1 %v335_v8  ;;  %v368_v19 = vld [vmem:[#allocation6 + $0x1f0] sm:$0xff]  ;;  %v331_v21 = vld [vmem:[#allocation6 + $0xc8] sm:$0xff]  ;;  %476 = vmatpush.msra.mxu3 %v369_v17  ;;  %v350_v22 = vld [vmem:[#allocation6 + $0x160] sm:$0xff]  ;;  %s805_s25 = scalar_lea.hbm %s804_s24, 1  ;;  %p810_p10 = scmp.lt.s32.totalorder %s804_s24, %s1070_s3 }
  0x2c   : > { %419 = vmatpush.msra.mxu0 %v318_v9  ;;  %457 = vmatpush.msra.mxu2 %v352_v16  ;;  %v367_v23 = vld [vmem:[#allocation6 + $0x1e8] sm:$0xff]  ;;  %v314_v24 = vld [vmem:[#allocation6 + $0x40] sm:$0xff]  ;;  %v349_v26 = vld [vmem:[#allocation6 + $0x158] sm:$0xff]  ;;  %p806_p1 = scmp.ne.s32.totalorder %s804_s24, %s805_s25  ;;  %p811_p11 = scmp.lt.s32.totalorder %s809_s15, %s805_s25 }
  0x2d   : > { %439 = vmatpush.msra.mxu1 %v334_v10  ;;  %v330_v25 = vld [vmem:[#allocation6 + $0xc0] sm:$0xff]  ;;  %477 = vmatpush.msra.mxu3 %v368_v19  ;;  %v313_v28 = vld [vmem:[#allocation6 + $0x38] sm:$0xff]  ;;  %v348_v30 = vld [vmem:[#allocation6 + $0x150] sm:$0xff] }
  0x2e   : > { %420 = vmatpush.msra.mxu0 %v317_v11  ;;  %458 = vmatpush.msra.mxu2 %v351_v18  ;;  %v366_v27 = vld [vmem:[#allocation6 + $0x1e0] sm:$0xff]  ;;  %v329_v29 = vld [vmem:[#allocation6 + $0xb8] sm:$0xff]  ;;  %v312_v32 = vld [vmem:[#allocation6 + $0x30] sm:$0xff]  ;;  %p807_p3 = pnand %p806_p1, %p972_p4  ;;  %p812_p12 = por %p811_p11, %p810_p10 }
  0x2f   : > { %440 = vmatpush.msra.mxu1 %v333_v12  ;;  %478 = vmatpush.msra.mxu3 %v367_v23  ;;  %v365_v31 = vld [vmem:[#allocation6 + $0x1d8] sm:$0xff]  ;;  %v328_v33 = vld [vmem:[#allocation6 + $0xb0] sm:$0xff]  ;;  %v347_v34 = vld [vmem:[#allocation6 + $0x148] sm:$0xff] }
  0x30   : > { %421 = vmatpush.msra.mxu0 %v316_v13  ;;  %459 = vmatpush.msra.mxu2 %v350_v22  ;;  %v364_v35 = vld [vmem:[#allocation6 + $0x1d0] sm:$0xff]  ;;  %v311_v36 = vld [vmem:[#allocation6 + $0x28] sm:$0xff]  ;;  %v346_v38 = vld [vmem:[#allocation6 + $0x140] sm:$0xff]  ;;  %p808_p8 = pneg %p807_p3 }
  0x31   : > { %441 = vmatpush.msra.mxu1 %v332_v15  ;;  %479 = vmatpush.msra.mxu3 %v366_v27  ;;  %v327_v37 = vld [vmem:[#allocation6 + $0xa8] sm:$0xff]  ;;  %v310_v40 = vld [vmem:[#allocation6 + $0x20] sm:$0xff]  ;;  %v345_v42 = vld [vmem:[#allocation6 + $0x138] sm:$0xff] }
  0x32   : > { %422 = vmatpush.msra.mxu0 %v315_v20  ;;  %460 = vmatpush.msra.mxu2 %v349_v26  ;;  %v363_v39 = vld [vmem:[#allocation6 + $0x1c8] sm:$0xff]  ;;  %v326_v41 = vld [vmem:[#allocation6 + $0xa0] sm:$0xff]  ;;  %v309_v44 = vld [vmem:[#allocation6 + $0x18] sm:$0xff]  ;;  %p813_p13 = pnand %p812_p12, %p808_p8 }
  0x33   : > { %442 = vmatpush.msra.mxu1 %v331_v21  ;;  %480 = vmatpush.msra.mxu3 %v365_v31  ;;  %v362_v43 = vld [vmem:[#allocation6 + $0x1c0] sm:$0xff]  ;;  %v325_v45 = vld [vmem:[#allocation6 + $0x98] sm:$0xff]  ;;  %v344_v46 = vld [vmem:[#allocation6 + $0x130] sm:$0xff] }
  0x34   : > { %423 = vmatpush.msra.mxu0 %v314_v24  ;;  %461 = vmatpush.msra.mxu2 %v348_v30  ;;  %v361_v47 = vld [vmem:[#allocation6 + $0x1b8] sm:$0xff]  ;;  %v308_v48 = vld [vmem:[#allocation6 + $0x10] sm:$0xff]  ;;  %v307_v50 = vld [vmem:[#allocation6 + $0x8] sm:$0xff] }
  0x35   : > { %443 = vmatpush.msra.mxu1 %v330_v25  ;;  %481 = vmatpush.msra.mxu3 %v364_v35  ;;  %v324_v49 = vld [vmem:[#allocation6 + $0x90] sm:$0xff]  ;;  %v343_v51 = vld [vmem:[#allocation6 + $0x128] sm:$0xff]  ;;  %v306_v53 = vld [vmem:[#allocation6] sm:$0xff] }
  0x36   : > { %424 = vmatpush.msra.mxu0 %v313_v28  ;;  %462 = vmatpush.msra.mxu2 %v347_v34  ;;  %v360_v52 = vld [vmem:[#allocation6 + $0x1b0] sm:$0xff]  ;;  %v323_v54 = vld [vmem:[#allocation6 + $0x88] sm:$0xff]  ;;  %v322_v55 = vld [vmem:[#allocation6 + $0x80] sm:$0xff] }
  0x37   : > { %444 = vmatpush.msra.mxu1 %v329_v29  ;;  %482 = vmatpush.msra.mxu3 %v363_v39  ;;  %v385_v56 = vld [vmem:[#allocation6 + $0x278] sm:$0xff]  ;;  %v342_v58 = vld [vmem:[#allocation6 + $0x120] sm:$0xff]  ;;  %v359_v59 = vld [vmem:[#allocation6 + $0x1a8] sm:$0xff] }
  0x38   : > { %425 = vmatpush.msra.mxu0 %v312_v32  ;;  %463 = vmatpush.msra.mxu2 %v346_v38  ;;  %v401_v57 = vld [vmem:[#allocation6 + $0x2f8] sm:$0xff]  ;;  %v230_v60 = vld [vmem:[%s998_s6] sm:$0xff]  ;;  %v232_v62 = vld [vmem:[%s998_s6 + $0x10] sm:$0xff] }
  0x39   : > { %445 = vmatpush.msra.mxu1 %v328_v33  ;;  %483 = vmatpush.msra.mxu3 %v362_v43  ;;  %v231_v61 = vld [vmem:[%s998_s6 + $0x8] sm:$0xff]  ;;  %v233_v63 = vld [vmem:[%s998_s6 + $0x18] sm:$0xff]  ;;  %v234_v0 = vld [vmem:[%s998_s6 + $0x20] sm:$0xff]  ;;  %v237_v3 = vrot.slane %v230_v60, 4  ;;  %v249_v5 = vrot.slane %v232_v62, 4 }
  0x3a   : > { %426 = vmatpush.msra.mxu0 %v311_v36  ;;  %464 = vmatpush.msra.mxu2 %v345_v42  ;;  %v235_v2 = vld [vmem:[%s998_s6 + $0x28] sm:$0xff]  ;;  %v243_v4 = vrot.slane %v231_v61, 4  ;;  %v358_v7 = vld [vmem:[#allocation6 + $0x1a0] sm:$0xff]  ;;  %v255_v8 = vrot.slane %v233_v63, 4  ;;  %v261_v9 = vrot.slane %v234_v0, 4  ;;  %v384_v11 = vld [vmem:[#allocation6 + $0x270] sm:$0xff] }
  0x3b   : > { %446 = vmatpush.msra.mxu1 %v327_v37  ;;  %484 = vmatpush.msra.mxu3 %v361_v47  ;;  %v341_v6 = vld [vmem:[#allocation6 + $0x118] sm:$0xff]  ;;  %v267_v10 = vrot.slane %v235_v2, 4  ;;  %v400_v12 = vld [vmem:[#allocation6 + $0x2f0] sm:$0xff]  ;;  %v238_v13 = vadd.f32 %v237_v3, %v230_v60  ;;  %v250_v15 = vadd.f32 %v249_v5, %v232_v62  ;;  %v383_v21 = vld [vmem:[#allocation6 + $0x268] sm:$0xff] }
  0x3c   : > { %427 = vmatpush.msra.mxu0 %v310_v40  ;;  %465 = vmatpush.msra.mxu2 %v344_v46  ;;  %v244_v14 = vadd.f32 %v243_v4, %v231_v61  ;;  %v340_v16 = vld [vmem:[#allocation6 + $0x110] sm:$0xff]  ;;  %v357_v17 = vld [vmem:[#allocation6 + $0x198] sm:$0xff]  ;;  %v256_v18 = vadd.f32 %v255_v8, %v233_v63  ;;  %v262_v19 = vadd.f32 %v261_v9, %v234_v0  ;;  %v399_v22 = vld [vmem:[#allocation6 + $0x2e8] sm:$0xff] }
  0x3d   : > { %447 = vmatpush.msra.mxu1 %v326_v41  ;;  %485 = vmatpush.msra.mxu3 %v360_v52  ;;  %v268_v20 = vadd.f32 %v267_v10, %v235_v2  ;;  %v239_v23 = vrot.slane %v238_v13, 2  ;;  %v251_v25 = vrot.slane %v250_v15, 2  ;;  %v339_v26 = vld [vmem:[#allocation6 + $0x108] sm:$0xff]  ;;  %v356_v27 = vld [vmem:[#allocation6 + $0x190] sm:$0xff]  ;;  %v382_v31 = vld [vmem:[#allocation6 + $0x260] sm:$0xff] }
  0x3e   : > { %428 = vmatpush.msra.mxu0 %v309_v44  ;;  %466 = vmatpush.msra.mxu2 %v343_v51  ;;  %v245_v24 = vrot.slane %v244_v14, 2  ;;  %v257_v28 = vrot.slane %v256_v18, 2  ;;  %v263_v29 = vrot.slane %v262_v19, 2  ;;  %v398_v32 = vld [vmem:[#allocation6 + $0x2e0] sm:$0xff]  ;;  %v355_v37 = vld [vmem:[#allocation6 + $0x188] sm:$0xff]  ;;  %v381_v41 = vld [vmem:[#allocation6 + $0x258] sm:$0xff] }
  0x3f   : > { %448 = vmatpush.msra.mxu1 %v325_v45  ;;  %486 = vmatpush.msra.mxu3 %v359_v59  ;;  %v269_v30 = vrot.slane %v268_v20, 2  ;;  %v240_v33 = vadd.f32 %v239_v23, %v238_v13  ;;  %v252_v35 = vadd.f32 %v251_v25, %v250_v15  ;;  %v338_v36 = vld [vmem:[#allocation6 + $0x100] sm:$0xff]  ;;  %v397_v42 = vld [vmem:[#allocation6 + $0x2d8] sm:$0xff]  ;;  %v396_v51 = vld [vmem:[#allocation6 + $0x2d0] sm:$0xff] }
  0x40   : > { %429 = vmatpush.msra.mxu0 %v308_v48  ;;  %467 = vmatpush.msra.mxu2 %v342_v58  ;;  %v246_v34 = vadd.f32 %v245_v24, %v244_v14  ;;  %v258_v38 = vadd.f32 %v257_v28, %v256_v18  ;;  %v264_v39 = vadd.f32 %v263_v29, %v262_v19  ;;  %v379_v58 = vld [vmem:[#allocation6 + $0x248] sm:$0xff]  ;;  %v378_v2 = vld [vmem:[#allocation6 + $0x240] sm:$0xff]  ;;  %v236_v5 = vld [vmem:[#allocation2] sm:$0x3f] }
  0x41   : > { %449 = vmatpush.msra.mxu1 %v324_v49  ;;  %487 = vmatpush.msra.mxu3 %v358_v7  ;;  %v270_v40 = vadd.f32 %v269_v30, %v268_v20  ;;  %v241_v43 = vrot.slane %v240_v33, 1  ;;  %v253_v45 = vrot.slane %v252_v35, 1  ;;  %v354_v49 = vld [vmem:[#allocation6 + $0x180] sm:$0xff]  ;;  %v395_v59 = vld [vmem:[#allocation6 + $0x2c8] sm:$0xff]  ;;  %v377_v8 = vld [vmem:[#allocation6 + $0x238] sm:$0xff] }
  0x42   : > { %430 = vmatpush.msra.mxu0 %v307_v50  ;;  %468 = vmatpush.msra.mxu2 %v341_v6  ;;  %v247_v44 = vrot.slane %v246_v34, 1  ;;  %v259_v46 = vrot.slane %v258_v38, 1  ;;  %v265_v47 = vrot.slane %v264_v39, 1  ;;  %v380_v50 = vld [vmem:[#allocation6 + $0x250] sm:$0xff]  ;;  %v394_v3 = vld [vmem:[#allocation6 + $0x2c0] sm:$0xff]  ;;  %v393_v9 = vld [vmem:[#allocation6 + $0x2b8] sm:$0xff] }
  0x43   : > { %450 = vmatpush.msra.mxu1 %v323_v54  ;;  %488 = vmatpush.msra.mxu3 %v357_v17  ;;  %v271_v48 = vrot.slane %v270_v40, 1  ;;  %v242_v52 = vadd.f32 %v241_v43, %v240_v33  ;;  %v254_v54 = vadd.f32 %v253_v45, %v252_v35  ;;  %v392_v13 = vld [vmem:[#allocation6 + $0x2b0] sm:$0xff]  ;;  %v375_v15 = vld [vmem:[#allocation6 + $0x228] sm:$0xff]  ;;  %v374_v17 = vld [vmem:[#allocation6 + $0x220] sm:$0xff] }
  0x44   : > { %431 = vmatpush.msra.mxu0 %v306_v53  ;;  %469 = vmatpush.msra.mxu2 %v340_v16  ;;  %v248_v53 = vadd.f32 %v247_v44, %v246_v34  ;;  %v391_v16 = vld [vmem:[#allocation6 + $0x2a8] sm:$0xff]  ;;  %v390_v18 = vld [vmem:[#allocation6 + $0x2a0] sm:$0xff]  ;;  %v373_v19 = vld [vmem:[#allocation6 + $0x218] sm:$0xff] }
  0x45   : > { %451 = vmatpush.msra.mxu1 %v322_v55  ;;  %489 = vmatpush.msra.mxu3 %v356_v27  ;;  %v260_v55 = vadd.f32 %v259_v46, %v258_v38  ;;  %v280_v61 = vrot.slane %v254_v54, 6  ;;  %v389_v20 = vld [vmem:[#allocation6 + $0x298] sm:$0xff]  ;;  %v371_v25 = vld [vmem:[#allocation6 + $0x208] sm:$0xff]  ;;  %v370_v30 = vld [vmem:[#allocation6 + $0x200] sm:$0xff] }
  0x46   : > { %496 = vmatpush.msrb.mxu0 %v385_v56  ;;  %470 = vmatpush.msra.mxu2 %v339_v26  ;;  %v266_v56 = vadd.f32 %v265_v47, %v264_v39  ;;  %v279_v60 = vrot.slane %v248_v53, 7  ;;  %v387_v1 = vld [vmem:[#allocation6 + $0x288] sm:$0xff]  ;;  %v402_v34 = vld [vmem:[%s1069_s2] sm:$0x1] }
  0x47   : > { %516 = vmatpush.msrb.mxu1 %v401_v57  ;;  %490 = vmatpush.msra.mxu3 %v355_v37  ;;  %v272_v57 = vadd.f32 %v271_v48, %v270_v40  ;;  %v281_v62 = vrot.slane %v260_v55, 5 }
  0x48   : > { %497 = vmatpush.msrb.mxu0 %v384_v11  ;;  %471 = vmatpush.msra.mxu2 %v338_v36  ;;  %v282_v63 = vrot.slane %v266_v56, 4  ;;  %v285_v4 = vsel %vm284_vm1, %v242_v52, %v279_v60 }
  0x49   : > { %517 = vmatpush.msrb.mxu1 %v400_v12  ;;  %491 = vmatpush.msra.mxu3 %v354_v49  ;;  %v283_v0 = vrot.slane %v272_v57, 3  ;;  %v287_v6 = vsel %vm286_vm2, %v285_v4, %v280_v61  ;;  %v376_v12 = vld [vmem:[#allocation6 + $0x230] sm:$0xff] }
  0x4a   : > { %498 = vmatpush.msrb.mxu0 %v383_v21  ;;  %v289_v7 = vsel %vm288_vm3, %v281_v62, %v282_v63  ;;  %v372_v21 = vld [vmem:[#allocation6 + $0x210] sm:$0xff] }
  0x4b   : > { %518 = vmatpush.msrb.mxu1 %v399_v22  ;;  %v291_v10 = vsel %vm290_vm4, %v289_v7, %v283_v0  ;;  %v388_v22 = vld [vmem:[#allocation6 + $0x290] sm:$0xff] }
  0x4c   : > { %499 = vmatpush.msrb.mxu0 %v382_v31  ;;  %v293_v11 = vsel %vm292_vm5, %v287_v6, %v291_v10  ;;  %v386_v31 = vld [vmem:[#allocation6 + $0x280] sm:$0xff] }
  0x4d   : > { %519 = vmatpush.msrb.mxu1 %v398_v32  ;;  %v295_v14 = vadd.f32 %v293_v11, %v236_v5 }
  0x4e   : > { %500 = vmatpush.msrb.mxu0 %v381_v41 }
  0x4f   : > { %520 = vmatpush.msrb.mxu1 %v397_v42  ;;  %300 = vst.msk [vmem:[#allocation2] sm:$0x3f] %vm1008_vm0, %v295_v14 }
  0x50   : > { %501 = vmatpush.msrb.mxu0 %v380_v50 }
  0x51   : > { %521 = vmatpush.msrb.mxu1 %v396_v51 }
  0x52   : > { %502 = vmatpush.msrb.mxu0 %v379_v58 }
  0x53   : > { %522 = vmatpush.msrb.mxu1 %v395_v59 }
  0x54   : > { %503 = vmatpush.msrb.mxu0 %v378_v2 }
  0x55   : > { %523 = vmatpush.msrb.mxu1 %v394_v3 }
  0x56   : > { %504 = vmatpush.msrb.mxu0 %v377_v8  ;;  %v304_v23 = vld [vmem:[#allocation2] sm:$0x3f] }
  0x57   : > { %524 = vmatpush.msrb.mxu1 %v393_v9  ;;  %v305_v24 = vmul.f32 0.125, %v304_v23 }
  0x58   : > { %505 = vmatpush.msrb.mxu0 %v376_v12 }
  0x59   : > { %525 = vmatpush.msrb.mxu1 %v392_v13  ;;  %v406_v26 = vperm.slane %v305_v24, 2  ;;  %v404_v27 = vperm.slane %v305_v24, 0  ;;  %v407_v28 = vperm.slane %v305_v24, 3  ;;  %v405_v29 = vperm.slane %v305_v24, 1 }
  0x5a   : > { %506 = vmatpush.msrb.mxu0 %v375_v15  ;;  %v408_v32 = vperm.slane %v305_v24, 4  ;;  %v409_v33 = vperm.slane %v305_v24, 5 }
  0x5b   : > { %526 = vmatpush.msrb.mxu1 %v391_v16  ;;  %472 = vmatmul.f32.vlgmr.msra.gmra.mxu2 %v406_v26 }
  0x5c   : > { %507 = vmatpush.msrb.mxu0 %v374_v17  ;;  %492 = vmatmul.f32.vlgmr.msra.gmra.mxu3 %v407_v28 }
  0x5d   : > { %527 = vmatpush.msrb.mxu1 %v390_v18  ;;  %432 = vmatmul.f32.vlgmr.msra.gmra.mxu0 %v404_v27 }
  0x5e   : > { %508 = vmatpush.msrb.mxu0 %v373_v19  ;;  %452 = vmatmul.f32.vlgmr.msra.gmra.mxu1 %v405_v29 }
  0x5f   : > { %528 = vmatpush.msrb.mxu1 %v389_v20 }
  0x60   : > { %509 = vmatpush.msrb.mxu0 %v372_v21 }
  0x61   : > { %529 = vmatpush.msrb.mxu1 %v388_v22 }
  0x62   : > { %510 = vmatpush.msrb.mxu0 %v371_v25 }
  0x63   : > { %530 = vmatpush.msrb.mxu1 %v387_v1 }
  0x64   : > { %511 = vmatpush.msrb.mxu0 %v370_v30 }
  0x65   : > { %531 = vmatpush.msrb.mxu1 %v386_v31  ;;  %512 = vmatmul.f32.vlgmr.msrb.gmra.mxu0 %v408_v32 }
  0x66   : > { %532 = vmatmul.f32.vlgmr.msrb.gmra.mxu1 %v409_v33 }
  0xda   : > { %v433_v35 = vpop.f32.mrf.mxu0 }
  0xdb   : > { %v434_v36 = vadd.f32 %v433_v35, %v402_v34  ;;  %v453_v37 = vpop.f32.mrf.mxu1 }
  0xdd   : > { %v454_v38 = vadd.f32 %v453_v37, %v434_v36 }
  0xde   : > { %v473_v39 = vpop.f32.mrf.mxu2 }
  0xdf   : > { %v474_v40 = vadd.f32 %v473_v39, %v454_v38  ;;  %v493_v41 = vpop.f32.mrf.mxu3 }
  0xe1   : > { %v494_v43 = vadd.f32 %v493_v41, %v474_v40 }
  0xe2   : > { %v513_v42 = vpop.f32.mrf.mxu0 }
  0xe3   : > { %v533_v44 = vpop.f32.mrf.mxu1  ;;  %v514_v45 = vadd.f32 %v513_v42, %v494_v43 }
  0xe5   : > { %v534_v46 = vadd.f32 %v533_v44, %v514_v45 }
  0xe7   : > { %727 = vtanh.f32 %v534_v46 }
  0xed   : > { %v728_v47 = vpop.eup %727 }
  0xee   : > { %537 = vst [vmem:[%s220_s20] sm:$0x1] %v728_v47 }
  0xef   : > { %816 = shalt.err (!%p813_p13)
}
  0xf0   : > { %657 = dma.vmem_to_hbm [thread:$0]  (%p972_p4), %s550_s21, 16, %s552_s18, %s539_s22  }
  0xf1 PF: > { %s563_s28 = sand.u32 1, %s855_s12   ;;  %p668_p0 = pnand %p642_p6, %p980_p7 }
  0xf2   : > { %s564_s6 = scalar_lea.sflag [#allocation5], %s563_s28 }
  0xf3   : > { %p669_p2 = pneg %p668_p0 }
  0xf5   : > { %850 = dma.done.wait (%p669_p2), %s564_s6, 16  }
  0xf6   : > { %852 = vsyncadd (%p669_p2), %s564_s6, 4294967280  ;;  %s20_s17 = sadd.s32 1, %s875_s17   ;;  %s1079_s12 = smov %s859_s13 }
  0xf7   : > { %p17_p5 = scmp.ge.s32.totalorder %s20_s17, 4   ;;  %s1080_s13 = smov %s863_s14 }
  0xf8   : > { %s1081_s14 = smov %s978_s8  ;;  %s1082_s15 = smov %s871_s16 }
  0xf9   : > { %s1083_s16 = smov %s1085_s29  ;;  %19 = sbr.rel (!%p17_p5) target bundleno = 7 (0x7), region = 89 }
  0xfe   :  { %569 = vsyncpa [#allocation4], 1 }
  0xff   :  { %571 = vsyncpa [#allocation4 + $0x1], 1 }
 0x100   :  { %572 = vsyncpa [#allocation7], 1 }
 0x101   :  { %573 = vsyncpa [#allocation5], 1 }
 0x102   :  { %575 = vsyncpa [#allocation5 + $0x1], 1 }

</bundles_post_ra>
